<compile_context>
chip_gen: v7x
topology: tpu7x:2x2x1
jax: 0.10.0
libtpu: 0.0.40
codegen_flags: <defaults>
</compile_context>

<pallas_src>
import functools
import math

import jax
import jax.numpy as jnp
import numpy as np
from jax.experimental import pallas as pl
from jax.experimental.pallas import tpu as pltpu


# ---------------------------------------------------------------------------
# Helpers
# ---------------------------------------------------------------------------
def _vmem_capacity_bytes():
    """Physical VMEM per TensorCore (64 MiB v7x, 128 MiB v5e/v6e)."""
    try:
        cap = getattr(pltpu.get_tpu_info(), "vmem_capacity_bytes", None)
        if cap:
            return int(cap)
    except Exception:
        pass
    return 64 * 2**20  # conservative fallback (v7x per-TC)


def _block_structure_from_dense(adj_np, tile_n, tile_k):
    """Host-side scan of a (concrete) dense adjacency for non-zero blocks."""
    n = adj_np.shape[0]
    nrb, nkb = n // tile_n, n // tile_k
    dense = np.asarray(adj_np).astype(np.float32)
    nz = (dense != 0.0).reshape(nrb, tile_n, nkb, tile_k).any(axis=(1, 3))
    cnt = nz.sum(axis=1).astype(np.int32)
    max_k = max(int(cnt.max()), 1)
    cols = np.zeros((nrb, max_k), dtype=np.int32)
    for r in range(nrb):
        idx = np.flatnonzero(nz[r]).astype(np.int32)
        if idx.size:
            cols[r, : idx.size] = idx
            cols[r, idx.size:] = idx[-1]  # padded steps re-use last block (skipped)
    # Flatten to 1D: 2D SMEM pads to [ceil(R/8)*8, ceil(C/128)*128] words.
    return jnp.asarray(cols.reshape(-1)), jnp.asarray(cnt), max_k


# ---------------------------------------------------------------------------
# Kernel 1: feature projection  xw = x @ W^T  (W pre-transposed + lane-padded)
# ---------------------------------------------------------------------------
def _project_kernel(x_ref, wt_ref, xw_ref):
    xw_ref[...] = jnp.dot(
        x_ref[...], wt_ref[...], preferred_element_type=jnp.float32
    ).astype(xw_ref.dtype)


def _project(x, w_t_padded, out_dtype, tile_m=512):
    n, c_in = x.shape
    c_out_p = w_t_padded.shape[1]
    tile_m = min(tile_m, n)
    assert n % tile_m == 0
    return pl.pallas_call(
        _project_kernel,
        out_shape=jax.ShapeDtypeStruct((n, c_out_p), out_dtype),
        grid_spec=pltpu.PrefetchScalarGridSpec(
            num_scalar_prefetch=0,
            grid=(n // tile_m,),
            in_specs=[
                pl.BlockSpec((tile_m, c_in), lambda i: (i, 0)),
                pl.BlockSpec((c_in, c_out_p), lambda i: (0, 0)),
            ],
            out_specs=pl.BlockSpec((tile_m, c_out_p), lambda i: (i, 0)),
        ),
        compiler_params=pltpu.CompilerParams(dimension_semantics=("parallel",)),
    )(x, w_t_padded)


# ---------------------------------------------------------------------------
# Kernel 2: K-tiled, block-sparse  out = adj @ xw + b
# ---------------------------------------------------------------------------
def _gcn_agg_kernel(cols_ref, cnt_ref, adj_ref, xw_ref, b_ref, out_ref, *scratch,
                    max_k, tile_k, xw_resident):
    # cols_ref: (nrb*max_k,) SMEM  non-zero column-block ids (flattened)
    # cnt_ref:  (nrb,)       SMEM  valid entries per row tile
    # adj_ref:  (tile_n, tile_k)   current adjacency block
    # xw_ref:   (N, c_out_p) if resident else (tile_k, c_out_p)
    # b_ref:    (1, c_out_p)       bias (lane-padded, f32)
    # out_ref:  (tile_n, c_out_p)  resident across the k axis
    # scratch:  optional f32 accumulator (only when out dtype is narrower than f32)
    acc_ref = scratch[0] if scratch else out_ref
    i = pl.program_id(0)
    k = pl.program_id(1)

    @pl.when(k == 0)
    def _init():
        # Seed the accumulator with the bias -> no separate add at finalize.
        acc_ref[...] = jnp.broadcast_to(b_ref[...], acc_ref.shape).astype(acc_ref.dtype)

    # Skip column blocks that are structurally zero for this row tile
    # (padded steps repeat the previous block id, so their DMA is elided).
    @pl.when(k < cnt_ref[i])
    def _accumulate():
        if xw_resident:
            start = pl.multiple_of(cols_ref[i * max_k + k] * tile_k, tile_k)
            xw_blk = xw_ref[pl.ds(start, tile_k), :]
        else:
            xw_blk = xw_ref[...]
        acc_ref[...] += jnp.dot(adj_ref[...], xw_blk,
                                preferred_element_type=jnp.float32)

    if scratch:
        @pl.when(k == pl.num_programs(1) - 1)
        def _finalize():
            out_ref[...] = acc_ref[...].astype(out_ref.dtype)


def gcn_conv(x, adj_norm, weight, bias, *, tile_n=512, tile_k=256,
             compute_dtype=None, block_cols=None, block_cnt=None):
    n, c_in = x.shape
    c_out = weight.shape[0]
    assert adj_norm.shape == (n, n)

    # Streamed-adjacency dtype. Pass the adjacency already in the compute dtype
    # (e.g. bf16, cast once at model setup) to avoid a dense N^2 astype pass here.
    if compute_dtype is None:
        compute_dtype = adj_norm.dtype
    adj_c = adj_norm if adj_norm.dtype == compute_dtype else adj_norm.astype(compute_dtype)

    tile_n = min(tile_n, n)
    tile_k = min(tile_k, n)
    # Keep >= 2 row tiles so the "parallel" axis can feed both v7x TensorCores.
    if n // tile_n < 2 and n >= 256:
        tile_n = n // 2
    # TODO(synk): ragged last tiles are not handled; pad N to a tile multiple upstream.
    assert n % tile_n == 0 and n % tile_k == 0
    assert tile_n % 8 == 0 and (tile_k % 128 == 0 or tile_k == n)

    # Lane-dense output: pad the feature axis to a multiple of 128 (sliced back below).
    c_out_p = ((c_out + 127) // 128) * 128

    # Pre-transpose + pad the Linear weight / bias once in the wrapper.
    w_t_p = jnp.zeros((c_in, c_out_p), x.dtype).at[:, :c_out].set(
        weight.T.astype(x.dtype))
    bias_p = jnp.zeros((1, c_out_p), jnp.float32).at[:, :c_out].set(
        jnp.reshape(bias, (1, c_out)).astype(jnp.float32))

    # Reassociated math: out = adj @ (x @ W^T) + b.
    xw = _project(x, w_t_p, out_dtype=compute_dtype)

    if block_cols is None or block_cnt is None:
        # Needs concrete adjacency values (do not jit this wrapper).
        block_cols, block_cnt, max_k = _block_structure_from_dense(
            adj_norm, tile_n, tile_k)
    else:
        max_k = block_cols.shape[0] // (n // tile_n)

    nrb = n // tile_n
    in_bpe = jnp.dtype(compute_dtype).itemsize
    out_dtype = x.dtype
    out_bpe = jnp.dtype(out_dtype).itemsize
    out_is_f32 = out_dtype == jnp.float32

    # Per-generation VMEM budget (~75% of physical per-TC VMEM).
    budget = (_vmem_capacity_bytes() * 3) // 4

    adj_buf = 2 * tile_n * tile_k * in_bpe            # double-buffered adj block
    out_buf = 2 * tile_n * c_out_p * out_bpe          # double-buffered out block
    acc_buf = 0 if out_is_f32 else tile_n * c_out_p * 4
    bias_buf = 2 * c_out_p * 4
    xw_res_buf = 2 * n * c_out_p * in_bpe             # fully resident xw
    xw_blk_buf = 2 * tile_k * c_out_p * in_bpe        # per-k streamed xw block

    base = adj_buf + out_buf + acc_buf + bias_buf
    xw_resident = (base + xw_res_buf) <= budget
    need = base + (xw_res_buf if xw_resident else xw_blk_buf)
    vmem_limit = int(min(budget, max(2 * need, 16 * 2**20)))

    if xw_resident:
        xw_spec = pl.BlockSpec((n, c_out_p), lambda i, k, cols, cnt: (0, 0))
    else:
        xw_spec = pl.BlockSpec((tile_k, c_out_p),
                               lambda i, k, cols, cnt: (cols[i * max_k + k], 0))

    scratch_shapes = [] if out_is_f32 else [pltpu.VMEM((tile_n, c_out_p), jnp.float32)]

    kernel = functools.partial(
        _gcn_agg_kernel, max_k=max_k, tile_k=tile_k, xw_resident=xw_resident)

    # If measurement showed exposed DMA on the data-dependent adj fetch, add
    # pipeline_mode=pl.Buffered(3) on the adjacency BlockSpec (costs VMEM).
    out_p = pl.pallas_call(
        kernel,
        out_shape=jax.ShapeDtypeStruct((n, c_out_p), out_dtype),
        grid_spec=pltpu.PrefetchScalarGridSpec(
            num_scalar_prefetch=2,            # block_cols (flat), block_cnt -> SMEM
            grid=(nrb, max_k),                # reduction (k) axis last
            in_specs=[
                # adjacency row tile, data-dependent column block
                pl.BlockSpec((tile_n, tile_k),
                             lambda i, k, cols, cnt: (i, cols[i * max_k + k])),
                # projected features: resident or streamed
                xw_spec,
                # bias (tiny, resident)
                pl.BlockSpec((1, c_out_p), lambda i, k, cols, cnt: (0, 0)),
            ],
            out_specs=pl.BlockSpec((tile_n, c_out_p),
                                   lambda i, k, cols, cnt: (i, 0)),
            scratch_shapes=scratch_shapes,
        ),
        compiler_params=pltpu.CompilerParams(
            dimension_semantics=("parallel", "arbitrary"),
            vmem_limit_bytes=vmem_limit,
        ),
    )(block_cols, block_cnt, adj_c, xw, bias_p)

    return out_p[:, :c_out]


# ---------------------------------------------------------------------------
# Helpers matching the PyTorch module's init / demo graph
# ---------------------------------------------------------------------------
def xavier_uniform(key, shape, dtype=jnp.float32):
    fan_out, fan_in = shape  # Linear weight is [out_features, in_features]
    bound = math.sqrt(6.0 / (fan_in + fan_out))
    return jax.random.uniform(key, shape, dtype=dtype, minval=-bound, maxval=bound)


def build_normalized_adjacency(n):
    # Ring graph + self loops, symmetrically normalized: D^-1/2 (A+I) D^-1/2
    idx = jnp.arange(n)
    a = jnp.zeros((n, n), jnp.float32)
    a = a.at[idx, (idx + 1) % n].set(1.0)
    a = a.at[(idx + 1) % n, idx].set(1.0)
    a = a + jnp.eye(n, dtype=jnp.float32)
    deg = a.sum(axis=1)
    dinv = 1.0 / jnp.sqrt(deg)
    return a * dinv[:, None] * dinv[None, :]


if __name__ == "__main__":
    # 4 row tiles (512) x 8 column blocks (256); the ring graph touches only
    # 4 of 8 column blocks per row tile, exercising the block-sparse skip.
    N, C_IN, C_OUT = 2048, 32, 16

    key = jax.random.PRNGKey(0)
    k_x, k_w = jax.random.split(key)

    x = jax.random.normal(k_x, (N, C_IN), dtype=jnp.float32)
    adj_norm = build_normalized_adjacency(N)          # f32, for the reference
    adj_bf16 = adj_norm.astype(jnp.bfloat16)          # one-time setup cast (hoisted)

    weight = xavier_uniform(k_w, (C_OUT, C_IN))       # lin.weight (xavier_uniform_)
    bias = jnp.zeros((C_OUT,), jnp.float32)           # lin.bias (zeros_)

    # Reference in float64 numpy, in the original (non-reassociated) order.
    ref = (np.asarray(adj_norm, np.float64) @ np.asarray(x, np.float64)) \
        @ np.asarray(weight, np.float64).T + np.asarray(bias, np.float64)

    # Default fast path: bf16 adjacency / xw stream, f32 accumulation & output.
    out = gcn_conv(x, adj_bf16, weight, bias)
    out = jax.block_until_ready(out)
    assert out.shape == (N, C_OUT)
    assert np.allclose(np.asarray(out, np.float64), ref, atol=6e-2, rtol=6e-2)

    # Full f32 path (tighter numerical check).
    out_f32 = gcn_conv(x, adj_norm, weight, bias)
    out_f32 = jax.block_until_ready(out_f32)
    assert np.allclose(np.asarray(out_f32, np.float64), ref, atol=2e-3, rtol=2e-3)

    print("KERNEL_OK")
</pallas_src>

<mosaic_0001>
module attributes {stable_mosaic.version = 11 : i64} {
  func.func @_project_kernel(%arg0: i32, %arg1: memref<512x32xf32, #tpu.memory_space<vmem>>, %arg2: memref<32x128xf32, #tpu.memory_space<vmem>>, %arg3: memref<512x128xbf16, #tpu.memory_space<vmem>>) attributes {dimension_semantics = [#tpu.dimension_semantics<parallel>], iteration_bounds = array<i64: 4>, scalar_prefetch = 0 : i64, scratch_operands = 0 : i64, tpu.core_type = #tpu.core_type<tc>, window_params = [{transform_indices = @transform_0, window_bounds = array<i64: 512, 32>}, {pipeline_mode = #tpu.pipeline_mode<synchronous>, transform_indices = @transform_1, window_bounds = array<i64: 32, 128>}, {transform_indices = @transform_2, window_bounds = array<i64: 512, 128>}]} {
    %c0 = arith.constant 0 : index
    %c0_0 = arith.constant 0 : index
    %0 = vector.load %arg1[%c0, %c0_0] : memref<512x32xf32, #tpu.memory_space<vmem>>, vector<512x32xf32>
    %c0_1 = arith.constant 0 : index
    %c0_2 = arith.constant 0 : index
    %1 = vector.load %arg2[%c0_1, %c0_2] : memref<32x128xf32, #tpu.memory_space<vmem>>, vector<32x128xf32>
    %cst = arith.constant dense<0.000000e+00> : vector<512x128xf32>
    %2 = tpu.matmul %0, %1, %cst {dimension_numbers = #tpu.dot_dimension_numbers<[1], [0], [0], [1], [0, 0, 1, 1], [], []>} : vector<512x32xf32>, vector<32x128xf32>, vector<512x128xf32> -> vector<512x128xf32>
    %3 = arith.truncf %2 : vector<512x128xf32> to vector<512x128xbf16>
    %c0_3 = arith.constant 0 : index
    %c0_4 = arith.constant 0 : index
    %4 = vector.load %arg3[%c0_3, %c0_4] : memref<512x128xbf16, #tpu.memory_space<vmem>>, vector<512x128xbf16>
    tpu.vector_store %arg3[%c0_3, %c0_4], %3 {strides = array<i32>} : memref<512x128xbf16, #tpu.memory_space<vmem>>, vector<512x128xbf16>,
    return
  }
  func.func @transform_0(%arg0: i32) -> (i32, i32) {
    %c0_i32 = arith.constant 0 : i32
    %c0_i32_0 = arith.constant 0 : i32
    return %arg0, %c0_i32 : i32, i32
  }
  func.func @transform_1(%arg0: i32) -> (i32, i32) {
    %c0_i32 = arith.constant 0 : i32
    %c0_i32_0 = arith.constant 0 : i32
    %c0_i32_1 = arith.constant 0 : i32
    return %c0_i32, %c0_i32_0 : i32, i32
  }
  func.func @transform_2(%arg0: i32) -> (i32, i32) {
    %c0_i32 = arith.constant 0 : i32
    %c0_i32_0 = arith.constant 0 : i32
    return %arg0, %c0_i32 : i32, i32
  }
}

</mosaic_0001>

<bundles_post_ra>
// kernel: tpu_custom_call.1
= control target key start
LH: loop header
LB: loop body
LE: loop exit
PB: predicated region body
PF: predicated region fallthrough
CT: control target
= control target key end

     0   :  { %7 = vsyncpa [#allocation3], 0  ;;  %s2173_s0 = inlined_call_operand.vmem [shape: f32[2048,32], index: 0, kind: input, shape index: {}]   ;;  %s2174_s1 = inlined_call_operand.vmem [shape: f32[32,128], index: 1, kind: input, shape index: {}]   ;;  %s2175_s2 = inlined_call_operand.hbm [shape: bf16[2048,128], index: 2, kind: output, shape index: {}]  }
   0x1   :  { %9 = vsyncpa [#allocation3 + $0x1], 0  ;;  %s1890_s9 = smov 0   ;;  %s1892_s10 = smov 0  }
   0x2   :  { %s1894_s11 = smov 0   ;;  %s1896_s12 = smov 0  }
   0x3 LB: > { %s1911_s13 = sadd.s32 4294967295, %s1870_s12   ;;  %s1187_s14 = sadd.s32 4294967294, %s1870_s12   ;;  %s1870_s12 = sphi %s1896_s12, %s2181_s12   ;;  %s1866_s11 = sphi %s1894_s11, %s2180_s11   ;;  %s1862_s10 = sphi %s1892_s10, %s2179_s10   ;;  %s1858_s9 = sphi %s1890_s9, %s2178_s9  }
   0x4   : > { %s1915_s15 = sadd.s32 1, %s1870_s12   ;;  %s69_s16 = sadd.s32 1, %s1866_s11 }
   0x5   : > { %s66_s17 = ssub.s32 %s1870_s12, %s1915_s15  ;;  %p79_p0 = scmp.ne.s32.totalorder %s1866_s11, %s1862_s10 }
   0x6   : > { %p67_p1 = scmp.eq.s32.totalorder %s66_s17, 0  ;;  %p80_p2 = scmp.eq.s32.totalorder %s1911_s13, 3 }
   0x7   : > { %p85_p3 = scmp.ne.s32.totalorder %s1862_s10, %s1858_s9  ;;  %p86_p4 = scmp.eq.s32.totalorder %s1187_s14, 3 }
   0x8   : > { %s1926_s18 = scalar_select %p67_p1, %s1866_s11, %s69_s16  }
   0x9   : > { %p1928_p5 = por %p80_p2, %p79_p0  ;;  %p1932_p6 = por %p86_p4, %p85_p3 }
   0xa   : > { %p1190_p7 = scmp.ge.s32.totalorder %s1870_s12, 1  ;;  %p116_p8 = scmp.lt.s32.totalorder %s1870_s12, 5 }
   0xc   : > { %p117_p9 = pnand %p1190_p7, %p116_p8 }
   0xd   : > { %v209_v0 = vld [vmem:[%s2174_s1] sm:$0xff] (!%p117_p9)  ;;  %v210_v1 = vld [vmem:[%s2174_s1 + $0x8] sm:$0xff] (!%p117_p9)  ;;  %v211_v2 = vld [vmem:[%s2174_s1 + $0x10] sm:$0xff] (!%p117_p9)  ;;  %s1192_s27 = sshll.u32 (!%p117_p9), %s1911_s13, 6  ;;  %vm213_vm0 = vcmask (!%p117_p9), 261120   ;;  %s135_s6 = sand.u32 (!%p117_p9), 1, %s1862_s10  }
   0xe   : > { %120 = sbr.rel (%p117_p9) target bundleno = 317 (0x13d), region = 28  ;;  %v1755_v3 = vpack.c.bf16 (!%p117_p9), %v210_v1, %v209_v0  ;;  %v212_v4 = vld [vmem:[%s2174_s1 + $0x18] sm:$0xff] (!%p117_p9)  ;;  %p139_p10 = scmp.lt.s32.totalorder (!%p117_p9), %s1192_s27, 255 }
   0xf   : > { %v1759_v5 = vpack.c.bf16 (!%p117_p9), %v212_v4, %v211_v2  ;;  %s1191_s7 = sshll.u32 (!%p117_p9), %s135_s6, 8  ;;  %s1391_s14 = sshll.u32 (!%p117_p9), %s1911_s13, 12 }
  0x10   : > { %1756 = vmatprep.subr.bf16.mxu0 (!%p117_p9), %v1755_v3  ;;  %1763 = vmatprep.subr.bf16.mxu1 (!%p117_p9), %v1755_v3  ;;  %s2087_s8 = scalar_lea.vmem (!%p117_p9), [#allocation2], %s1191_s7  ;;  %s2124_s22 = scalar_lea.hbm (!%p117_p9), %s2175_s2, %s1391_s14 }
  0x11   : > { %1758 = vmatpush3.bf16.msra.mxu0 (!%p117_p9), %v1755_v3  ;;  %1765 = vmatpush3.bf16.msra.mxu1 (!%p117_p9), %v1755_v3  ;;  %s1125_s16 = sshll.u32 (!%p117_p9), %s2087_s8, 4  ;;  %s2132_s13 = scalar_lea.sflag (!%p117_p9), [#allocation3], %s135_s6  ;;  %s2126_s16 = int_to_ptr.vmem [resolvable:$true] %s1125_s16 }
  0x12   : > { %1760 = vmatprep.subr.bf16.mxu0 (!%p117_p9), %v1759_v5  ;;  %1764 = vmatprep.subr.bf16.mxu1 (!%p117_p9), %v1759_v5  ;;  %s1808_s23 = scalar_lea.vmem (!%p117_p9), %s2126_s16, 4096  ;;  %s1872_s24 = smov (!%p117_p9), [#allocation2]  }
  0x13   : > { %p1809_p11 = scmp.ne.s32.totalorder (!%p117_p9), %s2126_s16, %s1808_s23  ;;  %s1812_s25 = sshll.u32 (!%p117_p9), %s1872_s24, 4  ;;  %s1813_s25 = int_to_ptr.vmem [resolvable:$false] %s1812_s25 }
  0x14   : > { %s1814_s26 = scalar_lea.vmem (!%p117_p9), %s1813_s25, 8192  ;;  %p1815_p0 = scmp.lt.s32.totalorder (!%p117_p9), %s2126_s16, %s1813_s25 }
  0x15   : > { %s2183_s27 = smov (!%p139_p10, %s1192_s27), 255  ;;  %1762 = vmatpush3.bf16.msra.mxu0 %v1759_v5  ;;  %1766 = vmatpush3.bf16.msra.mxu1 %v1759_v5  ;;  %p1810_p12 = pnand %p1809_p11, %p1928_p5 }
  0x16   : > { %s1193_s30 = sshll.u32 %s2183_s27, 3  ;;  %p1816_p1 = scmp.lt.s32.totalorder %s1814_s26, %s1808_s23 }
  0x17   : > { %s1954_s5 = scalar_lea.vmem %s2173_s0, %s1193_s30  ;;  %p1811_p13 = pneg %p1810_p12 }
  0x18   : > { %v145_v6 = vld [vmem:[%s1954_s5] sm:$0xff]  ;;  %v146_v8 = vld [vmem:[%s1954_s5 + $0x8] sm:$0xff]  ;;  %v147_v10 = vld [vmem:[%s1954_s5 + $0x10] sm:$0xff]  ;;  %p1817_p2 = por %p1816_p1, %p1815_p0 }
  0x19   : > { %v177_v7 = vld [vmem:[%s1954_s5 + $0x100] sm:$0xff]  ;;  %v178_v9 = vld [vmem:[%s1954_s5 + $0x108] sm:$0xff]  ;;  %1659 = vmatprep.mubr.msk.f32.mxu0 %vm213_vm0, %v145_v6  ;;  %v179_v11 = vld [vmem:[%s1954_s5 + $0x110] sm:$0xff] }
  0x1a   : > { %1707 = vmatprep.mubr.msk.f32.mxu1 %vm213_vm0, %v177_v7  ;;  %1660 = vmatmul.mubr.msk.f32.vlgmr.msra.gmra.mrb[0].mxu0 %vm213_vm0, %v146_v8  ;;  %v148_v12 = vld [vmem:[%s1954_s5 + $0x18] sm:$0xff]  ;;  %v149_v14 = vld [vmem:[%s1954_s5 + $0x20] sm:$0xff]  ;;  %v150_v16 = vld [vmem:[%s1954_s5 + $0x28] sm:$0xff]  ;;  %p1818_p3 = pnand %p1817_p2, %p1811_p13 }
  0x1b   : > { %1708 = vmatmul.mubr.msk.f32.vlgmr.msra.gmra.mrb[0].mxu1 %vm213_vm0, %v178_v9  ;;  %1662 = vmatprep.mubr.msk.f32.mxu0 %vm213_vm0, %v147_v10  ;;  %v180_v13 = vld [vmem:[%s1954_s5 + $0x118] sm:$0xff]  ;;  %v181_v15 = vld [vmem:[%s1954_s5 + $0x120] sm:$0xff]  ;;  %v182_v17 = vld [vmem:[%s1954_s5 + $0x128] sm:$0xff] }
  0x1c   : > { %1710 = vmatprep.mubr.msk.f32.mxu1 %vm213_vm0, %v179_v11  ;;  %v151_v18 = vld [vmem:[%s1954_s5 + $0x30] sm:$0xff]  ;;  %v152_v20 = vld [vmem:[%s1954_s5 + $0x38] sm:$0xff]  ;;  %v153_v22 = vld [vmem:[%s1954_s5 + $0x40] sm:$0xff] }
  0x1d   : > { %v183_v19 = vld [vmem:[%s1954_s5 + $0x130] sm:$0xff]  ;;  %v184_v21 = vld [vmem:[%s1954_s5 + $0x138] sm:$0xff]  ;;  %v185_v23 = vld [vmem:[%s1954_s5 + $0x140] sm:$0xff] }
  0x1e   : > { %1663 = vmatmul.mubr.msk.f32.gmra.mrb[2].mxu0 %vm213_vm0, %v148_v12  ;;  %v154_v24 = vld [vmem:[%s1954_s5 + $0x48] sm:$0xff]  ;;  %v155_v26 = vld [vmem:[%s1954_s5 + $0x50] sm:$0xff]  ;;  %v156_v28 = vld [vmem:[%s1954_s5 + $0x58] sm:$0xff] }
  0x1f   : > { %1711 = vmatmul.mubr.msk.f32.gmra.mrb[2].mxu1 %vm213_vm0, %v180_v13  ;;  %1665 = vmatprep.mubr.msk.f32.mxu0 %vm213_vm0, %v149_v14  ;;  %v186_v25 = vld [vmem:[%s1954_s5 + $0x148] sm:$0xff]  ;;  %v187_v27 = vld [vmem:[%s1954_s5 + $0x150] sm:$0xff]  ;;  %v188_v29 = vld [vmem:[%s1954_s5 + $0x158] sm:$0xff] }
  0x20   : > { %1713 = vmatprep.mubr.msk.f32.mxu1 %vm213_vm0, %v181_v15  ;;  %v157_v30 = vld [vmem:[%s1954_s5 + $0x60] sm:$0xff]  ;;  %v158_v32 = vld [vmem:[%s1954_s5 + $0x68] sm:$0xff]  ;;  %v159_v34 = vld [vmem:[%s1954_s5 + $0x70] sm:$0xff] }
  0x21   : > { %v189_v31 = vld [vmem:[%s1954_s5 + $0x160] sm:$0xff]  ;;  %v190_v33 = vld [vmem:[%s1954_s5 + $0x168] sm:$0xff]  ;;  %v191_v35 = vld [vmem:[%s1954_s5 + $0x170] sm:$0xff] }
  0x22   : > { %1666 = vmatmul.mubr.msk.f32.gmra.mrb[4].mxu0 %vm213_vm0, %v150_v16  ;;  %v160_v36 = vld [vmem:[%s1954_s5 + $0x78] sm:$0xff]  ;;  %v161_v38 = vld [vmem:[%s1954_s5 + $0x80] sm:$0xff]  ;;  %v162_v40 = vld [vmem:[%s1954_s5 + $0x88] sm:$0xff] }
  0x23   : > { %1714 = vmatmul.mubr.msk.f32.gmra.mrb[4].mxu1 %vm213_vm0, %v182_v17  ;;  %1668 = vmatprep.mubr.msk.f32.mxu0 %vm213_vm0, %v151_v18  ;;  %v192_v37 = vld [vmem:[%s1954_s5 + $0x178] sm:$0xff]  ;;  %v193_v39 = vld [vmem:[%s1954_s5 + $0x180] sm:$0xff]  ;;  %v194_v41 = vld [vmem:[%s1954_s5 + $0x188] sm:$0xff] }
  0x24   : > { %1716 = vmatprep.mubr.msk.f32.mxu1 %vm213_vm0, %v183_v19  ;;  %v163_v42 = vld [vmem:[%s1954_s5 + $0x90] sm:$0xff]  ;;  %v164_v44 = vld [vmem:[%s1954_s5 + $0x98] sm:$0xff]  ;;  %v165_v46 = vld [vmem:[%s1954_s5 + $0xa0] sm:$0xff] }
  0x25   : > { %v195_v43 = vld [vmem:[%s1954_s5 + $0x190] sm:$0xff]  ;;  %v196_v45 = vld [vmem:[%s1954_s5 + $0x198] sm:$0xff]  ;;  %v197_v47 = vld [vmem:[%s1954_s5 + $0x1a0] sm:$0xff] }
  0x26   : > { %1669 = vmatmul.mubr.msk.f32.gmra.mrb[6].mxu0 %vm213_vm0, %v152_v20  ;;  %v166_v48 = vld [vmem:[%s1954_s5 + $0xa8] sm:$0xff]  ;;  %v167_v50 = vld [vmem:[%s1954_s5 + $0xb0] sm:$0xff]  ;;  %v168_v52 = vld [vmem:[%s1954_s5 + $0xb8] sm:$0xff] }
  0x27   : > { %1717 = vmatmul.mubr.msk.f32.gmra.mrb[6].mxu1 %vm213_vm0, %v184_v21  ;;  %1671 = vmatprep.mubr.msk.f32.mxu0 %vm213_vm0, %v153_v22  ;;  %v198_v49 = vld [vmem:[%s1954_s5 + $0x1a8] sm:$0xff]  ;;  %v199_v51 = vld [vmem:[%s1954_s5 + $0x1b0] sm:$0xff]  ;;  %v200_v53 = vld [vmem:[%s1954_s5 + $0x1b8] sm:$0xff] }
  0x28   : > { %1719 = vmatprep.mubr.msk.f32.mxu1 %vm213_vm0, %v185_v23  ;;  %v169_v54 = vld [vmem:[%s1954_s5 + $0xc0] sm:$0xff]  ;;  %v170_v56 = vld [vmem:[%s1954_s5 + $0xc8] sm:$0xff]  ;;  %v171_v58 = vld [vmem:[%s1954_s5 + $0xd0] sm:$0xff] }
  0x29   : > { %v201_v55 = vld [vmem:[%s1954_s5 + $0x1c0] sm:$0xff]  ;;  %v202_v57 = vld [vmem:[%s1954_s5 + $0x1c8] sm:$0xff]  ;;  %v203_v59 = vld [vmem:[%s1954_s5 + $0x1d0] sm:$0xff] }
  0x2a   : > { %1672 = vmatmul.mubr.msk.f32.gmra.mrb[8].mxu0 %vm213_vm0, %v154_v24  ;;  %v172_v60 = vld [vmem:[%s1954_s5 + $0xd8] sm:$0xff]  ;;  %v173_v62 = vld [vmem:[%s1954_s5 + $0xe0] sm:$0xff]  ;;  %v174_v0 = vld [vmem:[%s1954_s5 + $0xe8] sm:$0xff] }
  0x2b   : > { %1720 = vmatmul.mubr.msk.f32.gmra.mrb[8].mxu1 %vm213_vm0, %v186_v25  ;;  %1674 = vmatprep.mubr.msk.f32.mxu0 %vm213_vm0, %v155_v26  ;;  %v204_v61 = vld [vmem:[%s1954_s5 + $0x1d8] sm:$0xff]  ;;  %v205_v63 = vld [vmem:[%s1954_s5 + $0x1e0] sm:$0xff]  ;;  %v206_v1 = vld [vmem:[%s1954_s5 + $0x1e8] sm:$0xff] }
  0x2c   : > { %1722 = vmatprep.mubr.msk.f32.mxu1 %vm213_vm0, %v187_v27  ;;  %v175_v2 = vld [vmem:[%s1954_s5 + $0xf0] sm:$0xff]  ;;  %v176_v4 = vld [vmem:[%s1954_s5 + $0xf8] sm:$0xff] }
  0x2d   : > { %v207_v3 = vld [vmem:[%s1954_s5 + $0x1f0] sm:$0xff]  ;;  %v208_v5 = vld [vmem:[%s1954_s5 + $0x1f8] sm:$0xff] }
  0x2e   : > { %1675 = vmatmul.mubr.msk.f32.gmra.mrb[10].mxu0 %vm213_vm0, %v156_v28 }
  0x2f   : > { %1723 = vmatmul.mubr.msk.f32.gmra.mrb[10].mxu1 %vm213_vm0, %v188_v29  ;;  %1677 = vmatprep.mubr.msk.f32.mxu0 %vm213_vm0, %v157_v30 }
  0x30   : > { %1725 = vmatprep.mubr.msk.f32.mxu1 %vm213_vm0, %v189_v31 }
  0x32   : > { %1678 = vmatmul.mubr.msk.f32.gmra.mrb[12].mxu0 %vm213_vm0, %v158_v32 }
  0x33   : > { %1726 = vmatmul.mubr.msk.f32.gmra.mrb[12].mxu1 %vm213_vm0, %v190_v33  ;;  %1680 = vmatprep.mubr.msk.f32.mxu0 %vm213_vm0, %v159_v34 }
  0x34   : > { %1728 = vmatprep.mubr.msk.f32.mxu1 %vm213_vm0, %v191_v35 }
  0x36   : > { %1681 = vmatmul.mubr.msk.f32.gmra.mrb[14].mxu0 %vm213_vm0, %v160_v36 }
  0x37   : > { %1729 = vmatmul.mubr.msk.f32.gmra.mrb[14].mxu1 %vm213_vm0, %v192_v37  ;;  %1683 = vmatprep.mubr.msk.f32.mxu0 %vm213_vm0, %v161_v38 }
  0x38   : > { %1731 = vmatprep.mubr.msk.f32.mxu1 %vm213_vm0, %v193_v39 }
  0x3a   : > { %1684 = vmatmul.mubr.msk.f32.gmra.mrb[16].mxu0 %vm213_vm0, %v162_v40 }
  0x3b   : > { %1732 = vmatmul.mubr.msk.f32.gmra.mrb[16].mxu1 %vm213_vm0, %v194_v41  ;;  %1686 = vmatprep.mubr.msk.f32.mxu0 %vm213_vm0, %v163_v42 }
  0x3c   : > { %1734 = vmatprep.mubr.msk.f32.mxu1 %vm213_vm0, %v195_v43 }
  0x3e   : > { %1687 = vmatmul.mubr.msk.f32.gmra.mrb[18].mxu0 %vm213_vm0, %v164_v44 }
  0x3f   : > { %1735 = vmatmul.mubr.msk.f32.gmra.mrb[18].mxu1 %vm213_vm0, %v196_v45  ;;  %1689 = vmatprep.mubr.msk.f32.mxu0 %vm213_vm0, %v165_v46 }
  0x40   : > { %1737 = vmatprep.mubr.msk.f32.mxu1 %vm213_vm0, %v197_v47 }
  0x42   : > { %1690 = vmatmul.mubr.msk.f32.gmra.mrb[20].mxu0 %vm213_vm0, %v166_v48 }
  0x43   : > { %1738 = vmatmul.mubr.msk.f32.gmra.mrb[20].mxu1 %vm213_vm0, %v198_v49  ;;  %1692 = vmatprep.mubr.msk.f32.mxu0 %vm213_vm0, %v167_v50 }
  0x44   : > { %1740 = vmatprep.mubr.msk.f32.mxu1 %vm213_vm0, %v199_v51 }
  0x46   : > { %1693 = vmatmul.mubr.msk.f32.gmra.mrb[22].mxu0 %vm213_vm0, %v168_v52 }
  0x47   : > { %1741 = vmatmul.mubr.msk.f32.gmra.mrb[22].mxu1 %vm213_vm0, %v200_v53  ;;  %1695 = vmatprep.mubr.msk.f32.mxu0 %vm213_vm0, %v169_v54 }
  0x48   : > { %1743 = vmatprep.mubr.msk.f32.mxu1 %vm213_vm0, %v201_v55 }
  0x4a   : > { %1696 = vmatmul.mubr.msk.f32.gmra.mrb[24].mxu0 %vm213_vm0, %v170_v56 }
  0x4b   : > { %1744 = vmatmul.mubr.msk.f32.gmra.mrb[24].mxu1 %vm213_vm0, %v202_v57  ;;  %1698 = vmatprep.mubr.msk.f32.mxu0 %vm213_vm0, %v171_v58 }
  0x4c   : > { %1746 = vmatprep.mubr.msk.f32.mxu1 %vm213_vm0, %v203_v59 }
  0x4e   : > { %1699 = vmatmul.mubr.msk.f32.gmra.mrb[26].mxu0 %vm213_vm0, %v172_v60 }
  0x4f   : > { %1747 = vmatmul.mubr.msk.f32.gmra.mrb[26].mxu1 %vm213_vm0, %v204_v61  ;;  %1701 = vmatprep.mubr.msk.f32.mxu0 %vm213_vm0, %v173_v62 }
  0x50   : > { %1749 = vmatprep.mubr.msk.f32.mxu1 %vm213_vm0, %v205_v63 }
  0x52   : > { %1702 = vmatmul.mubr.msk.f32.gmra.mrb[28].mxu0 %vm213_vm0, %v174_v0 }
  0x53   : > { %1750 = vmatmul.mubr.msk.f32.gmra.mrb[28].mxu1 %vm213_vm0, %v206_v1  ;;  %1704 = vmatprep.mubr.msk.f32.mxu0 %vm213_vm0, %v175_v2 }
  0x54   : > { %1752 = vmatprep.mubr.msk.f32.mxu1 %vm213_vm0, %v207_v3 }
  0x56   : > { %1705 = vmatmul.mubr.msk.f32.gmra.mrb[30].mxu0 %vm213_vm0, %v176_v4 }
  0x57   : > { %1753 = vmatmul.mubr.msk.f32.gmra.mrb[30].mxu1 %vm213_vm0, %v208_v5 }
  0xed   : > { %v1661_v6 = vpop.f32.mrb[0].mxu0 }
  0xee   : > { %v1709_v7 = vpop.f32.mrb[0].mxu1  ;;  %v472_v8 = vpop.f32.mrb[1].mxu0 }
  0xef   : > { %v632_v9 = vpop.f32.mrb[1].mxu1  ;;  %v1395_v10 = vpack.c.bf16 %v1661_v6, %v472_v8 }
  0xf0   : > { %v1475_v11 = vpack.c.bf16 %v1709_v7, %v632_v9 }
  0xf1   : > { %1396 = vst [vmem:[%s2087_s8] sm:$0xff] %v1395_v10   ;;  %v1664_v12 = vpop.f32.mrb[2].mxu0 }
  0xf2   : > { %1567 = vst [vmem:[%s2087_s8 + $0x80] sm:$0xff] %v1475_v11   ;;  %v1712_v13 = vpop.f32.mrb[2].mxu1  ;;  %v482_v14 = vpop.f32.mrb[3].mxu0 }
  0xf3   : > { %v642_v15 = vpop.f32.mrb[3].mxu1  ;;  %v1400_v16 = vpack.c.bf16 %v1664_v12, %v482_v14 }
  0xf4   : > { %v1480_v17 = vpack.c.bf16 %v1712_v13, %v642_v15 }
  0xf5   : > { %1552 = vst [vmem:[%s2087_s8 + $0x8] sm:$0xff] %v1400_v16   ;;  %v1667_v18 = vpop.f32.mrb[4].mxu0 }
  0xf6   : > { %1568 = vst [vmem:[%s2087_s8 + $0x88] sm:$0xff] %v1480_v17   ;;  %v1715_v19 = vpop.f32.mrb[4].mxu1  ;;  %v492_v20 = vpop.f32.mrb[5].mxu0 }
  0xf7   : > { %v652_v21 = vpop.f32.mrb[5].mxu1  ;;  %v1405_v22 = vpack.c.bf16 %v1667_v18, %v492_v20 }
  0xf8   : > { %v1485_v23 = vpack.c.bf16 %v1715_v19, %v652_v21 }
  0xf9   : > { %1553 = vst [vmem:[%s2087_s8 + $0x10] sm:$0xff] %v1405_v22   ;;  %v1670_v24 = vpop.f32.mrb[6].mxu0 }
  0xfa   : > { %1569 = vst [vmem:[%s2087_s8 + $0x90] sm:$0xff] %v1485_v23   ;;  %v1718_v25 = vpop.f32.mrb[6].mxu1  ;;  %v502_v26 = vpop.f32.mrb[7].mxu0 }
  0xfb   : > { %v662_v27 = vpop.f32.mrb[7].mxu1  ;;  %v1410_v28 = vpack.c.bf16 %v1670_v24, %v502_v26 }
  0xfc   : > { %v1490_v29 = vpack.c.bf16 %v1718_v25, %v662_v27 }
  0xfd   : > { %1554 = vst [vmem:[%s2087_s8 + $0x18] sm:$0xff] %v1410_v28   ;;  %v1673_v30 = vpop.f32.mrb[8].mxu0 }
  0xfe   : > { %1570 = vst [vmem:[%s2087_s8 + $0x98] sm:$0xff] %v1490_v29   ;;  %v1721_v31 = vpop.f32.mrb[8].mxu1  ;;  %v512_v32 = vpop.f32.mrb[9].mxu0 }
  0xff   : > { %v672_v33 = vpop.f32.mrb[9].mxu1  ;;  %v1415_v34 = vpack.c.bf16 %v1673_v30, %v512_v32 }
 0x100   : > { %v1495_v35 = vpack.c.bf16 %v1721_v31, %v672_v33 }
 0x101   : > { %1555 = vst [vmem:[%s2087_s8 + $0x20] sm:$0xff] %v1415_v34   ;;  %v1676_v36 = vpop.f32.mrb[10].mxu0 }
 0x102   : > { %1571 = vst [vmem:[%s2087_s8 + $0xa0] sm:$0xff] %v1495_v35   ;;  %v1724_v37 = vpop.f32.mrb[10].mxu1  ;;  %v522_v38 = vpop.f32.mrb[11].mxu0 }
 0x103   : > { %v682_v39 = vpop.f32.mrb[11].mxu1  ;;  %v1420_v40 = vpack.c.bf16 %v1676_v36, %v522_v38 }
 0x104   : > { %v1500_v41 = vpack.c.bf16 %v1724_v37, %v682_v39 }
 0x105   : > { %1556 = vst [vmem:[%s2087_s8 + $0x28] sm:$0xff] %v1420_v40   ;;  %v1679_v42 = vpop.f32.mrb[12].mxu0 }
 0x106   : > { %1572 = vst [vmem:[%s2087_s8 + $0xa8] sm:$0xff] %v1500_v41   ;;  %v1727_v43 = vpop.f32.mrb[12].mxu1  ;;  %v532_v44 = vpop.f32.mrb[13].mxu0 }
 0x107   : > { %v692_v45 = vpop.f32.mrb[13].mxu1  ;;  %v1425_v46 = vpack.c.bf16 %v1679_v42, %v532_v44 }
 0x108   : > { %v1505_v47 = vpack.c.bf16 %v1727_v43, %v692_v45 }
 0x109   : > { %1557 = vst [vmem:[%s2087_s8 + $0x30] sm:$0xff] %v1425_v46   ;;  %v1682_v48 = vpop.f32.mrb[14].mxu0 }
 0x10a   : > { %1573 = vst [vmem:[%s2087_s8 + $0xb0] sm:$0xff] %v1505_v47   ;;  %v1730_v49 = vpop.f32.mrb[14].mxu1  ;;  %v542_v50 = vpop.f32.mrb[15].mxu0 }
 0x10b   : > { %v702_v51 = vpop.f32.mrb[15].mxu1  ;;  %v1430_v52 = vpack.c.bf16 %v1682_v48, %v542_v50 }
 0x10c   : > { %v1510_v53 = vpack.c.bf16 %v1730_v49, %v702_v51 }
 0x10d   : > { %1558 = vst [vmem:[%s2087_s8 + $0x38] sm:$0xff] %v1430_v52   ;;  %v1685_v54 = vpop.f32.mrb[16].mxu0 }
 0x10e   : > { %1574 = vst [vmem:[%s2087_s8 + $0xb8] sm:$0xff] %v1510_v53   ;;  %v1733_v55 = vpop.f32.mrb[16].mxu1  ;;  %v552_v56 = vpop.f32.mrb[17].mxu0 }
 0x10f   : > { %v712_v57 = vpop.f32.mrb[17].mxu1  ;;  %v1435_v58 = vpack.c.bf16 %v1685_v54, %v552_v56 }
 0x110   : > { %v1515_v59 = vpack.c.bf16 %v1733_v55, %v712_v57 }
 0x111   : > { %1559 = vst [vmem:[%s2087_s8 + $0x40] sm:$0xff] %v1435_v58   ;;  %v1688_v60 = vpop.f32.mrb[18].mxu0 }
 0x112   : > { %1575 = vst [vmem:[%s2087_s8 + $0xc0] sm:$0xff] %v1515_v59   ;;  %v1736_v61 = vpop.f32.mrb[18].mxu1  ;;  %v562_v62 = vpop.f32.mrb[19].mxu0 }
 0x113   : > { %v722_v63 = vpop.f32.mrb[19].mxu1  ;;  %v1440_v0 = vpack.c.bf16 %v1688_v60, %v562_v62 }
 0x114   : > { %v1520_v1 = vpack.c.bf16 %v1736_v61, %v722_v63 }
 0x115   : > { %1560 = vst [vmem:[%s2087_s8 + $0x48] sm:$0xff] %v1440_v0   ;;  %v1691_v2 = vpop.f32.mrb[20].mxu0 }
 0x116   : > { %1576 = vst [vmem:[%s2087_s8 + $0xc8] sm:$0xff] %v1520_v1   ;;  %v1739_v3 = vpop.f32.mrb[20].mxu1  ;;  %v572_v4 = vpop.f32.mrb[21].mxu0 }
 0x117   : > { %v732_v5 = vpop.f32.mrb[21].mxu1  ;;  %v1445_v6 = vpack.c.bf16 %v1691_v2, %v572_v4 }
 0x118   : > { %v1525_v7 = vpack.c.bf16 %v1739_v3, %v732_v5 }
 0x119   : > { %1561 = vst [vmem:[%s2087_s8 + $0x50] sm:$0xff] %v1445_v6   ;;  %v1694_v8 = vpop.f32.mrb[22].mxu0 }
 0x11a   : > { %1577 = vst [vmem:[%s2087_s8 + $0xd0] sm:$0xff] %v1525_v7   ;;  %v1742_v9 = vpop.f32.mrb[22].mxu1  ;;  %v582_v10 = vpop.f32.mrb[23].mxu0 }
 0x11b   : > { %v742_v11 = vpop.f32.mrb[23].mxu1  ;;  %v1450_v12 = vpack.c.bf16 %v1694_v8, %v582_v10 }
 0x11c   : > { %v1530_v13 = vpack.c.bf16 %v1742_v9, %v742_v11 }
 0x11d   : > { %1562 = vst [vmem:[%s2087_s8 + $0x58] sm:$0xff] %v1450_v12   ;;  %v1697_v14 = vpop.f32.mrb[24].mxu0 }
 0x11e   : > { %1578 = vst [vmem:[%s2087_s8 + $0xd8] sm:$0xff] %v1530_v13   ;;  %v1745_v15 = vpop.f32.mrb[24].mxu1  ;;  %v592_v16 = vpop.f32.mrb[25].mxu0 }
 0x11f   : > { %v752_v17 = vpop.f32.mrb[25].mxu1  ;;  %v1455_v18 = vpack.c.bf16 %v1697_v14, %v592_v16 }
 0x120   : > { %v1535_v19 = vpack.c.bf16 %v1745_v15, %v752_v17 }
 0x121   : > { %1563 = vst [vmem:[%s2087_s8 + $0x60] sm:$0xff] %v1455_v18   ;;  %v1700_v20 = vpop.f32.mrb[26].mxu0 }
 0x122   : > { %1579 = vst [vmem:[%s2087_s8 + $0xe0] sm:$0xff] %v1535_v19   ;;  %v1748_v21 = vpop.f32.mrb[26].mxu1  ;;  %v602_v22 = vpop.f32.mrb[27].mxu0 }
 0x123   : > { %v762_v23 = vpop.f32.mrb[27].mxu1  ;;  %v1460_v24 = vpack.c.bf16 %v1700_v20, %v602_v22 }
 0x124   : > { %v1540_v25 = vpack.c.bf16 %v1748_v21, %v762_v23 }
 0x125   : > { %1564 = vst [vmem:[%s2087_s8 + $0x68] sm:$0xff] %v1460_v24   ;;  %v1703_v26 = vpop.f32.mrb[28].mxu0 }
 0x126   : > { %1580 = vst [vmem:[%s2087_s8 + $0xe8] sm:$0xff] %v1540_v25   ;;  %v1751_v27 = vpop.f32.mrb[28].mxu1  ;;  %v612_v28 = vpop.f32.mrb[29].mxu0 }
 0x127   : > { %v772_v29 = vpop.f32.mrb[29].mxu1  ;;  %v1465_v30 = vpack.c.bf16 %v1703_v26, %v612_v28 }
 0x128   : > { %v1545_v31 = vpack.c.bf16 %v1751_v27, %v772_v29 }
 0x129   : > { %1565 = vst [vmem:[%s2087_s8 + $0x70] sm:$0xff] %v1465_v30   ;;  %v1706_v32 = vpop.f32.mrb[30].mxu0 }
 0x12a   : > { %1581 = vst [vmem:[%s2087_s8 + $0xf0] sm:$0xff] %v1545_v31   ;;  %v1754_v33 = vpop.f32.mrb[30].mxu1  ;;  %v622_v34 = vpop.f32.mrb[31].mxu0 }
 0x12b   : > { %v782_v35 = vpop.f32.mrb[31].mxu1  ;;  %v1470_v36 = vpack.c.bf16 %v1706_v32, %v622_v34 }
 0x12c   : > { %v1550_v37 = vpack.c.bf16 %v1754_v33, %v782_v35 }
 0x12d   : > { %1566 = vst [vmem:[%s2087_s8 + $0x78] sm:$0xff] %v1470_v36  }
 0x12e   : > { %1582 = vst [vmem:[%s2087_s8 + $0xf8] sm:$0xff] %v1550_v37  }
 0x12f   : > { %1821 = shalt.err (!%p1818_p3)
}
 0x130   : > { %s1822_s27 = scalar_lea.hbm %s2124_s22, 4096  ;;  %s1826_s30 = scalar_lea.hbm %s2175_s2, 16384 }
 0x131   : > { %p1823_p4 = scmp.ne.s32.totalorder %s2124_s22, %s1822_s27  ;;  %p1827_p9 = scmp.lt.u32.totalorder %s2124_s22, %s2175_s2 }
 0x132   : > { %p1828_p10 = scmp.lt.u32.totalorder %s1826_s30, %s1822_s27  ;;  %p1830_p12 = scmp.lt.u32.totalorder %s1822_s27, %s2124_s22 }
 0x133   : > { %p1824_p7 = pnand %p1823_p4, %p1928_p5 }
 0x134   : > { %p1829_p11 = por %p1828_p10, %p1827_p9 }
 0x135   : > { %p1825_p8 = pneg %p1824_p7 }
 0x136   : > { %p1831_p13 = por %p1830_p12, %p1829_p11 }
 0x138   : > { %p1832_p0 = pnand %p1831_p13, %p1825_p8 }
 0x13a   : > { %1835 = shalt.err (!%p1832_p0)
}
 0x13b   : > { %s1873_s5 = smov 64   ;;  %s1874_s6 = smov 4  }
 0x13c   : > { %1767 = dma.vmem_to_hbm [thread:$0]  (%p1928_p5), %s2126_s16, 4096, %s2124_s22, %s2132_s13, %s1873_s5, %s1873_s5, %s1874_s6  }
 0x13d PF: > { %p1773_p1 = scmp.ge.s32.totalorder %s1870_s12, 2  ;;  %s1140_s7 = sand.u32 1, %s1858_s9  }
 0x13e   : > { %s1141_s8 = scalar_lea.sflag [#allocation3], %s1140_s7 }
 0x13f   : > { %p1770_p2 = pnand %p1773_p1, %p1932_p6 }
 0x141   : > { %1853 = dma.done.wait (!%p1770_p2), %s1141_s8, 4096  }
 0x142   : > { %1855 = vsyncadd (!%p1770_p2), %s1141_s8, 4294963200  ;;  %p12_p3 = scmp.ge.s32.totalorder %s1915_s15, 6   ;;  %s2178_s9 = smov %s1862_s10 }
 0x143   : > { %s2179_s10 = smov %s1866_s11  ;;  %s2180_s11 = smov %s1926_s18 }
 0x144   : > { %s2181_s12 = smov %s1915_s15  ;;  %14 = sbr.rel (!%p12_p3) target bundleno = 3 (0x3), region = 63 }
 0x14b   :  { %1146 = vsyncpa [#allocation3], 1 }
 0x14c   :  { %1148 = vsyncpa [#allocation3 + $0x1], 1 }

</bundles_post_ra>
